<compile_context>
chip_gen: v7x
topology: tpu7x:2x2x1
jax: 0.10.0
libtpu: 0.0.40
codegen_flags: <defaults>
</compile_context>

<pallas_src>
import functools
import math

import numpy as np
import jax
import jax.numpy as jnp
from jax.experimental import pallas as pl
from jax.experimental.pallas import tpu as pltpu


def _round_up(x, m):
    return (x + m - 1) // m * m


# ---------------------------------------------------------------------------
# AdaptiveAvgPool2d((7, 7))  ==  Ph @ x @ Pw^T per (batch, channel) slice
# ---------------------------------------------------------------------------

def _adaptive_pool_matrix(in_size, out_size=7):
    """Exact 1-D linear operator of torch.nn.AdaptiveAvgPool2d along one axis."""
    m = np.zeros((out_size, in_size), np.float32)
    for i in range(out_size):
        s = (i * in_size) // out_size
        e = ((i + 1) * in_size + out_size - 1) // out_size  # ceil
        m[i, s:e] = 1.0 / (e - s)
    return jnp.asarray(m)


def _avgpool_kernel(x_ref, ph_ref, pwt_ref, o_ref):
    x = x_ref[0]                                                        # (H, W)
    t = jnp.dot(ph_ref[...], x, preferred_element_type=jnp.float32)    # (7, W)
    y = jnp.dot(t, pwt_ref[...], preferred_element_type=jnp.float32)   # (7, 7)
    o_ref[0] = y.astype(o_ref.dtype)


def adaptive_avgpool_7x7(x):
    """x: (B, C, H, W) -> (B, C, 7, 7), identical to nn.AdaptiveAvgPool2d((7,7))."""
    B, C, H, W = x.shape
    ph = _adaptive_pool_matrix(H)          # (7, H)
    pwt = _adaptive_pool_matrix(W).T       # (W, 7), pre-transposed once
    xf = x.reshape(B * C, H, W).astype(jnp.float32)

    pooled = pl.pallas_call(
        _avgpool_kernel,
        out_shape=jax.ShapeDtypeStruct((B * C, 7, 7), jnp.float32),
        grid_spec=pltpu.PrefetchScalarGridSpec(
            num_scalar_prefetch=0,
            grid=(B * C,),
            in_specs=[
                pl.BlockSpec((1, H, W), lambda n: (n, 0, 0)),
                pl.BlockSpec((7, H), lambda n: (0, 0)),
                pl.BlockSpec((W, 7), lambda n: (0, 0)),
            ],
            out_specs=pl.BlockSpec((1, 7, 7), lambda n: (n, 0, 0)),
        ),
        compiler_params=pltpu.CompilerParams(
            dimension_semantics=("parallel",)),
    )(xf, ph, pwt)
    return pooled.reshape(B, C, 7, 7)


# ---------------------------------------------------------------------------
# Tiled Linear (+ fused ReLU):  y = x @ w_t + b
# ---------------------------------------------------------------------------

def _linear_kernel(x_ref, w_ref, b_ref, o_ref, acc_ref, *, apply_relu):
    k = pl.program_id(2)

    @pl.when(k == 0)
    def _():
        acc_ref[...] = jnp.zeros_like(acc_ref)

    acc_ref[...] += jnp.dot(x_ref[...], w_ref[...],
                            preferred_element_type=jnp.float32)

    @pl.when(k == pl.num_programs(2) - 1)
    def _():
        r = acc_ref[...] + b_ref[...]
        if apply_relu:
            r = jnp.maximum(r, 0.0)
        o_ref[...] = r.astype(o_ref.dtype)


def pallas_linear(x, w_t, b, *, apply_relu=False, tm=256, tn=256, tk=256):
    """x: (M, K) f32, w_t: (K, N) pre-transposed weight, b: (N,) -> (M, N) f32.

    bf16 MXU matmul with f32 VMEM accumulation; K tiled ('arbitrary') for
    DMA/compute overlap, M and N tiled ('parallel'); N padded lane-dense.
    """
    out_dtype = x.dtype
    M, K = x.shape
    K2, N = w_t.shape
    assert K == K2 and b.shape == (N,)

    TM = min(tm, _round_up(M, 16))    # sublane-dense for bf16
    TN = min(tn, _round_up(N, 128))   # lane-dense output stores
    TK = min(tk, _round_up(K, 128))
    Mp, Np, Kp = _round_up(M, TM), _round_up(N, TN), _round_up(K, TK)

    xp = jnp.pad(x.astype(jnp.bfloat16), ((0, Mp - M), (0, Kp - K)))
    wp = jnp.pad(w_t.astype(jnp.bfloat16), ((0, Kp - K), (0, Np - N)))
    bp = jnp.pad(b.astype(jnp.float32), (0, Np - N)).reshape(1, Np)

    grid = (Mp // TM, Np // TN, Kp // TK)
    kernel = functools.partial(_linear_kernel, apply_relu=apply_relu)

    cost = pl.CostEstimate(
        flops=2 * Mp * Kp * Np,
        transcendentals=0,
        bytes_accessed=(Mp * Kp + Kp * Np) * 2 + Np * 4 + Mp * Np * 4,
    )

    out = pl.pallas_call(
        kernel,
        out_shape=jax.ShapeDtypeStruct((Mp, Np), out_dtype),
        grid_spec=pltpu.PrefetchScalarGridSpec(
            num_scalar_prefetch=0,
            grid=grid,
            in_specs=[
                pl.BlockSpec((TM, TK), lambda i, j, k: (i, k)),
                pl.BlockSpec((TK, TN), lambda i, j, k: (k, j)),
                pl.BlockSpec((1, TN), lambda i, j, k: (0, j)),
            ],
            out_specs=pl.BlockSpec((TM, TN), lambda i, j, k: (i, j)),
            scratch_shapes=[pltpu.VMEM((TM, TN), jnp.float32)],
        ),
        compiler_params=pltpu.CompilerParams(
            dimension_semantics=("parallel", "parallel", "arbitrary")),
        cost_estimate=cost,
    )(xp, wp, bp)
    return out[:M, :N]


# ---------------------------------------------------------------------------
# OutputBlock forward + parameter init
# ---------------------------------------------------------------------------

def output_block_forward(x, params):
    """Inference forward of OutputBlock. x: (B, C, H, W) float32."""
    B, C, H, W = x.shape
    (w1_t, b1), (w2_t, b2), (w3_t, b3) = params

    pooled = adaptive_avgpool_7x7(x)            # (B, C, 7, 7)
    flat = pooled.reshape(B, C * 7 * 7)         # torch.flatten(x, start_dim=1)

    # classifier: Linear -> ReLU -> Dropout -> Linear -> Dropout -> ReLU -> Linear
    # TODO(synk): nn.Dropout is identity at inference; training-mode dropout
    # (pltpu.prng_seed / stateful_bernoulli) is not implemented here.
    h1 = pallas_linear(flat, w1_t, b1, apply_relu=True)
    h2 = pallas_linear(h1, w2_t, b2, apply_relu=True)
    y = pallas_linear(h2, w3_t, b3, apply_relu=False)
    return y


def init_output_block_params(key, num_classes, in_channels):
    """Default nn.Linear init; weights stored pre-transposed as (in_dim, out_dim).

    The original module hard-codes hidden=4096 and requires num_classes==4096;
    we keep that constraint as hidden == num_classes.
    """
    hidden = num_classes
    in_dim = in_channels * 7 * 7
    dims = [(in_dim, num_classes), (hidden, hidden), (hidden, num_classes)]
    params = []
    for (fan_in, fan_out), k in zip(dims, jax.random.split(key, 3)):
        kw, kb = jax.random.split(k)
        bound = 1.0 / math.sqrt(fan_in)
        w_t = jax.random.uniform(kw, (fan_in, fan_out), jnp.float32,
                                 minval=-bound, maxval=bound)
        b = jax.random.uniform(kb, (fan_out,), jnp.float32,
                               minval=-bound, maxval=bound)
        params.append((w_t, b))
    return params


if __name__ == "__main__":
    key = jax.random.PRNGKey(0)
    k_x, k_p = jax.random.split(key)

    # Small shapes consistent with the module (NCHW features into the head).
    batch, in_channels, H, W = 2, 8, 14, 14
    num_classes = 128            # == hidden (the original needs num_classes==4096)

    x = jax.random.normal(k_x, (batch, in_channels, H, W), jnp.float32)
    params = init_output_block_params(k_p, num_classes, in_channels)

    out = output_block_forward(x, params)
    out = jax.block_until_ready(out)
    assert out.shape == (batch, num_classes)

    # Reference: same math in plain JAX, with bf16-quantized matmul inputs to
    # mirror the kernel's bf16/f32-accumulate numerics.
    def ref_forward(x, params):
        B, C, Hh, Ww = x.shape
        pooled = x.reshape(B, C, 7, Hh // 7, 7, Ww // 7).mean(axis=(3, 5))
        h = pooled.reshape(B, -1)
        qs = lambda a: a.astype(jnp.bfloat16).astype(jnp.float32)
        (w1, b1), (w2, b2), (w3, b3) = params
        h = jnp.maximum(qs(h) @ qs(w1) + b1, 0.0)
        h = jnp.maximum(qs(h) @ qs(w2) + b2, 0.0)
        return qs(h) @ qs(w3) + b3

    ref = ref_forward(x, params)
    max_err = float(jnp.max(jnp.abs(out - ref)))
    assert jnp.allclose(out, ref, atol=5e-3, rtol=5e-2), max_err

    print("KERNEL_OK")
</pallas_src>

<mosaic_0001>
module attributes {stable_mosaic.version = 11 : i64} {
  func.func @_avgpool_kernel(%arg0: i32, %arg1: memref<1x14x14xf32, #tpu.memory_space<vmem>>, %arg2: memref<7x14xf32, #tpu.memory_space<vmem>>, %arg3: memref<14x7xf32, #tpu.memory_space<vmem>>, %arg4: memref<1x7x7xf32, #tpu.memory_space<vmem>>) attributes {dimension_semantics = [#tpu.dimension_semantics<parallel>], iteration_bounds = array<i64: 16>, scalar_prefetch = 0 : i64, scratch_operands = 0 : i64, tpu.core_type = #tpu.core_type<tc>, window_params = [{transform_indices = @transform_0, window_bounds = array<i64: 1, 14, 14>}, {pipeline_mode = #tpu.pipeline_mode<synchronous>, transform_indices = @transform_1, window_bounds = array<i64: 7, 14>}, {pipeline_mode = #tpu.pipeline_mode<synchronous>, transform_indices = @transform_2, window_bounds = array<i64: 14, 7>}, {transform_indices = @transform_3, window_bounds = array<i64: 1, 7, 7>}]} {
    %c0 = arith.constant 0 : index
    %c0_0 = arith.constant 0 : index
    %c0_1 = arith.constant 0 : index
    %0 = vector.load %arg1[%c0, %c0_0, %c0_1] : memref<1x14x14xf32, #tpu.memory_space<vmem>>, vector<1x14x14xf32>
    %1 = vector.shape_cast %0 : vector<1x14x14xf32> to vector<14x14xf32>
    %c0_2 = arith.constant 0 : index
    %c0_3 = arith.constant 0 : index
    %2 = vector.load %arg2[%c0_2, %c0_3] : memref<7x14xf32, #tpu.memory_space<vmem>>, vector<7x14xf32>
    %cst = arith.constant dense<0.000000e+00> : vector<7x14xf32>
    %3 = tpu.matmul %2, %1, %cst {dimension_numbers = #tpu.dot_dimension_numbers<[1], [0], [0], [1], [0, 0, 1, 1], [], []>} : vector<7x14xf32>, vector<14x14xf32>, vector<7x14xf32> -> vector<7x14xf32>
    %c0_4 = arith.constant 0 : index
    %c0_5 = arith.constant 0 : index
    %4 = vector.load %arg3[%c0_4, %c0_5] : memref<14x7xf32, #tpu.memory_space<vmem>>, vector<14x7xf32>
    %cst_6 = arith.constant dense<0.000000e+00> : vector<7x7xf32>
    %5 = tpu.matmul %3, %4, %cst_6 {dimension_numbers = #tpu.dot_dimension_numbers<[1], [0], [0], [1], [0, 0, 1, 1], [], []>} : vector<7x14xf32>, vector<14x7xf32>, vector<7x7xf32> -> vector<7x7xf32>
    %c0_7 = arith.constant 0 : index
    %c0_8 = arith.constant 0 : index
    %c0_9 = arith.constant 0 : index
    %6 = vector.load %arg4[%c0_7, %c0_8, %c0_9] : memref<1x7x7xf32, #tpu.memory_space<vmem>>, vector<1x7x7xf32>
    %7 = vector.shape_cast %6 : vector<1x7x7xf32> to vector<7x7xf32>
    %8 = vector.shape_cast %5 : vector<7x7xf32> to vector<1x7x7xf32>
    tpu.vector_store %arg4[%c0_7, %c0_8, %c0_9], %8 {strides = array<i32>} : memref<1x7x7xf32, #tpu.memory_space<vmem>>, vector<1x7x7xf32>,
    return
  }
  func.func @transform_0(%arg0: i32) -> (i32, i32, i32) {
    %c0_i32 = arith.constant 0 : i32
    %c0_i32_0 = arith.constant 0 : i32
    %c0_i32_1 = arith.constant 0 : i32
    return %arg0, %c0_i32, %c0_i32_0 : i32, i32, i32
  }
  func.func @transform_1(%arg0: i32) -> (i32, i32) {
    %c0_i32 = arith.constant 0 : i32
    %c0_i32_0 = arith.constant 0 : i32
    %c0_i32_1 = arith.constant 0 : i32
    return %c0_i32, %c0_i32_0 : i32, i32
  }
  func.func @transform_2(%arg0: i32) -> (i32, i32) {
    %c0_i32 = arith.constant 0 : i32
    %c0_i32_0 = arith.constant 0 : i32
    %c0_i32_1 = arith.constant 0 : i32
    return %c0_i32, %c0_i32_0 : i32, i32
  }
  func.func @transform_3(%arg0: i32) -> (i32, i32, i32) {
    %c0_i32 = arith.constant 0 : i32
    %c0_i32_0 = arith.constant 0 : i32
    %c0_i32_1 = arith.constant 0 : i32
    return %arg0, %c0_i32, %c0_i32_0 : i32, i32, i32
  }
}

</mosaic_0001>

<bundles_post_ra>
// kernel: tpu_custom_call.1
= control target key start
LH: loop header
LB: loop body
LE: loop exit
PB: predicated region body
PF: predicated region fallthrough
CT: control target
= control target key end

     0   :  { %s470_s12 = smov 0   ;;  %s496_s0 = inlined_call_operand.vmem [shape: f32[16,14,14], index: 0, kind: input, shape index: {}]   ;;  %s497_s1 = inlined_call_operand.vmem [shape: f32[7,14], index: 1, kind: input, shape index: {}]   ;;  %s498_s2 = inlined_call_operand.vmem [shape: f32[14,7], index: 2, kind: input, shape index: {}]   ;;  %s499_s3 = inlined_call_operand.vmem [shape: f32[16,7,7], index: 3, kind: output, shape index: {}]  }
   0x1 LB: > { %s383_s13 = sadd.s32 4294967295, %s444_s12   ;;  %p387_p0 = scmp.ge.s32.totalorder %s444_s12, 1  ;;  %s444_s12 = sphi %s470_s12, %s13_s12  }
   0x2   : > { %p137_p1 = scmp.lt.s32.totalorder %s444_s12, 17 }
   0x4   : > { %p138_p2 = pnand %p387_p0, %p137_p1 }
   0x5   : > { %p160_p3 = scmp.lt.s32.totalorder (!%p138_p2), %s383_s13, 15  ;;  %vm176_vm0 = vcmask (!%p138_p2), 1045504   ;;  %v250_v0 = vld [vmem:[%s498_s2] sm:$0xff] (!%p138_p2)  ;;  %v446_v1 = vmov (!%p138_p2), 0.0|0.0   ;;  %v251_v2 = vld [vmem:[%s498_s2 + $0x8] sm:$0x3f] (!%p138_p2) }
   0x6   : > { %141 = sbr.rel (%p138_p2) target bundleno = 447 (0x1bf), region = 32  ;;  %418 = vmatprep.subr.bf16.mxu0 (!%p138_p2), %v446_v1  ;;  %422 = vmatprep.subr.bf16.mxu1 (!%p138_p2), %v446_v1  ;;  %vm447_vm1 = vmmov (!%p138_p2), 0   ;;  %v448_v3 = vmov (!%p138_p2), 0.0   ;;  %v423_v4 = vpack.c.bf16 (!%p138_p2), %v251_v2, %v250_v0  ;;  %vm449_vm2 = vmmov (!%p138_p2), 1   ;;  %v171_v8 = vld [vmem:[%s497_s1] sm:$0x7f] (!%p138_p2) }
   0x7   : > { %408 = vmatprep.mubr.msk.f32.mxu0 (!%p138_p2), %vm447_vm1, %v448_v3  ;;  %415 = vmatprep.mubr.msk.f32.mxu1 (!%p138_p2), %vm447_vm1, %v448_v3  ;;  %vm420_vm3 = vmpackc.low (!%p138_p2), %vm176_vm0, %vm449_vm2  ;;  %vm172_vm4 = vcmask (!%p138_p2), 113664   ;;  %vm328_vm5 = vcmask (!%p138_p2), 55296  }
   0x8   : > { %425 = vmatpush3.bf16.msk.msra.mxu1 (!%p138_p2), %vm420_vm3, %v423_v4 }
   0xd   : > { %s501_s13 = smov (!%p160_p3, %s383_s13), 15 }
   0xe   : > { %s397_s18 = sshll.u32 %s501_s13, 4  ;;  %s390_s24 = sshll.u32 %s501_s13, 3 }
   0xf   : > { %s164_s21 = scalar_lea.vmem %s496_s0, %s397_s18  ;;  %s168_s27 = scalar_lea.vmem %s499_s3, %s390_s24 }
  0x10   : > { %v169_v5 = vld [vmem:[%s164_s21] sm:$0xff]  ;;  %v170_v6 = vld [vmem:[%s164_s21 + $0x8] sm:$0x3f] }
  0x11   : > { %v419_v7 = vpack.c.bf16 %v170_v6, %v169_v5 }
  0x13   : > { %421 = vmatpush3.bf16.msk.msra.mxu0 %vm420_vm3, %v419_v7 }
  0x16   : > { %409 = vmatmul.mubr.msk.f32.vlgmr.msra.gmra.mrb[0].mxu0 %vm172_vm4, %v171_v8 }
  0xe9   : > { %v246_v9 = vpop.f32.mrb[0].mxu0 }
  0xea   : > { %v410_v10 = vpop.f32.mrb[1].mxu0  ;;  %416 = vmatmul.mubr.msk.f32.vlgmr.msra.gmra.mrb[0].mxu1 %vm172_vm4, %v246_v9 }
 0x1bd   : > { %v324_v11 = vpop.f32.mrb[0].mxu1 }
 0x1be   : > { %329 = vst.msk [vmem:[%s168_s27] sm:$0x7f] %vm328_vm5, %v324_v11  ;;  %v417_v12 = vpop.f32.mrb[1].mxu1 }
 0x1bf PF: > { %s13_s12 = sadd.s32 1, %s444_s12  }
 0x1c0   : > { %p10_p4 = scmp.ge.s32.totalorder %s13_s12, 18  }
 0x1c2   :  { %12 = sbr.rel (!%p10_p4) target bundleno = 1 (0x1), region = 62 }

</bundles_post_ra>
